<compile_context>
chip_gen: v7x
topology: tpu7x:2x2x1
jax: 0.10.0
libtpu: 0.0.40
codegen_flags: <defaults>
</compile_context>

<pallas_src>
import functools

import jax
import jax.numpy as jnp
import numpy as np
from jax.experimental import pallas as pl
from jax.experimental.pallas import tpu as pltpu

_EPS = 1e-5
_LANES = 128
_TILE_M_TARGET = 256                       # rows per tile for pointwise stages
_VMEM_LIMIT_BYTES = 32 * 1024 * 1024       # explicit budget (safe on v5e/v6e/v7x)


def _round_up(x, m):
    return (x + m - 1) // m * m


def _pick_tile_m(m, target=_TILE_M_TARGET):
    """Largest divisor of m that is <= target and a multiple of 8 (else m)."""
    if m <= target:
        return m
    for t in range(target, 7, -1):
        if m % t == 0 and t % 8 == 0:
            return t
    return m


# ----------------------------------------------------------------------------
# Kernel 1 & 3: pointwise (1x1) conv as matmul, two-pass batch-stat BN,
#               optional ReLU6, optional fused residual add.
# Grid = (phase, row_tile).  Output / residual block index is (i*p) so nothing
# is fetched or written back during the statistics phase.
# ----------------------------------------------------------------------------
def _pointwise_bn_kernel(x_ref, w_ref, g_ref, b_ref, *rest,
                         relu6, eps, has_residual):
    if has_residual:
        res_ref, o_ref, sum_ref, ssq_ref = rest
    else:
        o_ref, sum_ref, ssq_ref = rest

    phase = pl.program_id(0)
    tile = pl.program_id(1)

    # 1x1 conv == matmul on the MXU (f32 operands, f32 accumulator).
    y = jnp.dot(x_ref[...], w_ref[...], preferred_element_type=jnp.float32)

    @pl.when((phase == 0) & (tile == 0))
    def _init():
        sum_ref[...] = jnp.zeros_like(sum_ref)
        ssq_ref[...] = jnp.zeros_like(ssq_ref)

    @pl.when(phase == 0)
    def _accumulate():                     # pass 1: per-channel sum / sum^2
        sum_ref[...] += jnp.sum(y, axis=0, keepdims=True)
        ssq_ref[...] += jnp.sum(y * y, axis=0, keepdims=True)

    @pl.when(phase == 1)
    def _normalize():                      # pass 2: BN + ReLU6 (+ residual)
        inv_m = 1.0 / (pl.num_programs(1) * x_ref.shape[0])
        mean = sum_ref[...] * inv_m
        var = ssq_ref[...] * inv_m - mean * mean
        scale = jax.lax.rsqrt(var + eps) * g_ref[...]
        shift = b_ref[...] - mean * scale
        out = y * scale + shift
        if relu6:
            out = jnp.clip(out, 0.0, 6.0)
        if has_residual:
            out = out + res_ref[...]
        o_ref[...] = out.astype(o_ref.dtype)


def pointwise_bn(x2d, w, gamma, beta, *, relu6, residual=None, eps=_EPS):
    m, c_in = x2d.shape
    c_out = w.shape[1]
    tile_m = _pick_tile_m(m)
    n_tiles = m // tile_m

    inputs = [x2d, w, gamma, beta]
    in_specs = [
        pl.BlockSpec((tile_m, c_in), lambda p, i: (i, 0)),
        pl.BlockSpec((c_in, c_out), lambda p, i: (0, 0)),
        pl.BlockSpec((1, c_out), lambda p, i: (0, 0)),
        pl.BlockSpec((1, c_out), lambda p, i: (0, 0)),
    ]
    if residual is not None:
        assert residual.shape == (m, c_out)
        inputs.append(residual)
        # Only needed in phase 1; block index stays 0 during phase 0 so the
        # pipeline does not keep re-fetching it.
        in_specs.append(
            pl.BlockSpec((tile_m, c_out), lambda p, i: (i * p, 0)))

    kernel = functools.partial(_pointwise_bn_kernel, relu6=relu6, eps=eps,
                               has_residual=residual is not None)

    return pl.pallas_call(
        kernel,
        out_shape=jax.ShapeDtypeStruct((m, c_out), jnp.float32),
        grid=(2, n_tiles),                              # (phase, row tile)
        in_specs=in_specs,
        out_specs=pl.BlockSpec((tile_m, c_out), lambda p, i: (i * p, 0)),
        scratch_shapes=[pltpu.VMEM((1, c_out), jnp.float32),
                        pltpu.VMEM((1, c_out), jnp.float32)],
        compiler_params=pltpu.CompilerParams(
            # Sequential: phase ordering + cross-tile stats accumulation.
            dimension_semantics=("arbitrary", "arbitrary"),
            vmem_limit_bytes=_VMEM_LIMIT_BYTES),
    )(*inputs)


# ----------------------------------------------------------------------------
# Kernel 2: 3x3 depthwise conv (groups == channels) with stride, zero halo
#           handled in-kernel, two-pass batch-stat BN, ReLU6.
# Grid = (phase, image).
# ----------------------------------------------------------------------------
def _depthwise_bn_kernel(x_ref, w_ref, g_ref, b_ref, o_ref,
                         pad_ref, sum_ref, ssq_ref, *, stride, eps):
    phase = pl.program_id(0)
    img = pl.program_id(1)
    _, H, W, C = x_ref.shape
    _, Ho, Wo, _ = o_ref.shape

    @pl.when((phase == 0) & (img == 0))
    def _init():
        # Zero once: the 1-pixel halo border stays zero for every image, the
        # interior is overwritten per step below (no wrapper jnp.pad / extra
        # HBM copy of the expanded activation).
        pad_ref[...] = jnp.zeros_like(pad_ref)
        sum_ref[...] = jnp.zeros_like(sum_ref)
        ssq_ref[...] = jnp.zeros_like(ssq_ref)

    pad_ref[:, 1:H + 1, 1:W + 1, :] = x_ref[...]

    xp = pad_ref[...]                      # (1, H+2, W+2, C), zero halo
    wts = w_ref[...]                       # (9, C), loaded once per step
    acc = jnp.zeros((1, Ho, Wo, C), jnp.float32)
    for kh in range(3):                    # statically unrolled 3x3 taps
        for kw in range(3):
            patch = jax.lax.slice(
                xp, (0, kh, kw, 0),
                (1, kh + (Ho - 1) * stride + 1, kw + (Wo - 1) * stride + 1, C),
                (1, stride, stride, 1))
            acc = acc + patch * wts[kh * 3 + kw]
    # TODO(synk): for stride=2 the sublane-strided W slice is XLU-heavy; a
    #             one-time even/odd column deinterleave would be cheaper.

    @pl.when(phase == 0)
    def _accumulate():                     # per-channel sum / sum^2 (no reshape)
        s_h = jnp.sum(acc, axis=1)                      # (1, Wo, C)
        sum_ref[...] += jnp.sum(s_h, axis=1)            # (1, C)
        s2_h = jnp.sum(acc * acc, axis=1)
        ssq_ref[...] += jnp.sum(s2_h, axis=1)

    @pl.when(phase == 1)
    def _normalize():
        inv = 1.0 / (pl.num_programs(1) * Ho * Wo)
        mean = sum_ref[...] * inv                        # (1, C)
        var = ssq_ref[...] * inv - mean * mean
        scale = jax.lax.rsqrt(var + eps) * g_ref[...]    # (1, C)
        shift = b_ref[...] - mean * scale                # (1, C)
        out = jnp.clip(acc * scale + shift, 0.0, 6.0)
        o_ref[...] = out.astype(o_ref.dtype)


def depthwise_bn(x_nhwc, w, gamma, beta, *, stride, eps=_EPS):
    n, h, wdim, c = x_nhwc.shape
    ho = (h - 1) // stride + 1             # kernel=3, pad=1
    wo = (wdim - 1) // stride + 1
    kernel = functools.partial(_depthwise_bn_kernel, stride=stride, eps=eps)
    return pl.pallas_call(
        kernel,
        out_shape=jax.ShapeDtypeStruct((n, ho, wo, c), jnp.float32),
        grid=(2, n),                                     # (phase, image)
        in_specs=[
            pl.BlockSpec((1, h, wdim, c), lambda p, i: (i, 0, 0, 0)),
            pl.BlockSpec((9, c), lambda p, i: (0, 0)),
            pl.BlockSpec((1, c), lambda p, i: (0, 0)),
            pl.BlockSpec((1, c), lambda p, i: (0, 0)),
        ],
        out_specs=pl.BlockSpec((1, ho, wo, c), lambda p, i: (i * p, 0, 0, 0)),
        scratch_shapes=[pltpu.VMEM((1, h + 2, wdim + 2, c), jnp.float32),
                        pltpu.VMEM((1, c), jnp.float32),
                        pltpu.VMEM((1, c), jnp.float32)],
        compiler_params=pltpu.CompilerParams(
            dimension_semantics=("arbitrary", "arbitrary"),
            vmem_limit_bytes=_VMEM_LIMIT_BYTES),
    )(x_nhwc, w, gamma, beta)


# ----------------------------------------------------------------------------
# Bottleneck forward (wrapper / glue)
# ----------------------------------------------------------------------------
def bottleneck_forward(x_nchw, params, *, stride, use_residual):
    n, c_in, h, w = x_nchw.shape
    c_hid = params["w1"].shape[1]
    c_out = params["w3"].shape[1]
    c_hid_p = _round_up(c_hid, _LANES)
    pad = c_hid_p - c_hid

    # Lane-dense hidden channels: zero-pad only the expanded channel axis.
    w1 = jnp.pad(params["w1"], ((0, 0), (0, pad)))
    g1 = jnp.pad(params["g1"], ((0, 0), (0, pad)))
    b1 = jnp.pad(params["b1"], ((0, 0), (0, pad)))
    w2 = jnp.pad(params["w2"], ((0, 0), (0, pad)))
    g2 = jnp.pad(params["g2"], ((0, 0), (0, pad)))
    b2 = jnp.pad(params["b2"], ((0, 0), (0, pad)))
    w3 = jnp.pad(params["w3"], ((0, pad), (0, 0)))

    x_nhwc = jnp.transpose(x_nchw, (0, 2, 3, 1))
    x2d = x_nhwc.reshape(n * h * w, c_in)

    # 1) expand: 1x1 conv + BN + ReLU6
    h1 = pointwise_bn(x2d, w1, g1, b1, relu6=True)           # (N*H*W, Chid_p)

    # 2) depthwise 3x3 (pad=1, stride=s) + BN + ReLU6 (halo handled in-kernel)
    h1 = h1.reshape(n, h, w, c_hid_p)                         # free reshape
    h2 = depthwise_bn(h1, w2, g2, b2, stride=stride)          # (N, Ho, Wo, Chid_p)
    _, ho, wo, _ = h2.shape
    h2_2d = h2.reshape(n * ho * wo, c_hid_p)

    # 3) project: 1x1 conv + BN (+ fused residual)
    res = x2d if use_residual else None
    out2d = pointwise_bn(h2_2d, w3, params["g3"], params["b3"],
                         relu6=False, residual=res)           # (N*Ho*Wo, Cout)

    out = out2d.reshape(n, ho, wo, c_out)
    return jnp.transpose(out, (0, 3, 1, 2))                   # back to NCHW


# ----------------------------------------------------------------------------
# Pure-JAX reference (for correctness check; uses the unpadded params)
# ----------------------------------------------------------------------------
def bottleneck_ref(x_nchw, params, *, stride, use_residual, eps=_EPS):
    x = jnp.transpose(x_nchw, (0, 2, 3, 1)).astype(jnp.float32)

    def bn(y, g, b):
        mean = jnp.mean(y, axis=(0, 1, 2), keepdims=True)
        var = jnp.mean(jnp.square(y - mean), axis=(0, 1, 2), keepdims=True)
        return (y - mean) * jax.lax.rsqrt(var + eps) * g[0] + b[0]

    h = jnp.einsum("nhwc,cd->nhwd", x, params["w1"])
    h = jnp.clip(bn(h, params["g1"], params["b1"]), 0.0, 6.0)

    n, hh, ww, c = h.shape
    hp = jnp.pad(h, ((0, 0), (1, 1), (1, 1), (0, 0)))
    ho = (hh - 1) // stride + 1
    wo = (ww - 1) // stride + 1
    acc = jnp.zeros((n, ho, wo, c), jnp.float32)
    for kh in range(3):
        for kw in range(3):
            acc = acc + hp[:, kh:kh + (ho - 1) * stride + 1:stride,
                           kw:kw + (wo - 1) * stride + 1:stride, :] \
                        * params["w2"][kh * 3 + kw]
    h2 = jnp.clip(bn(acc, params["g2"], params["b2"]), 0.0, 6.0)

    out = jnp.einsum("nhwc,cd->nhwd", h2, params["w3"])
    out = bn(out, params["g3"], params["b3"])
    if use_residual:
        out = out + x
    return jnp.transpose(out, (0, 3, 1, 2))


# ----------------------------------------------------------------------------
# Deterministic parameter construction (PyTorch shapes, stored channels-last)
# ----------------------------------------------------------------------------
def init_params(key, in_channels, out_channels, expansion):
    hid = expansion * in_channels
    ks = jax.random.split(key, 9)
    return {
        # conv1: PyTorch (hid, in, 1, 1) -> stored as (in, hid)
        "w1": jax.random.normal(ks[0], (in_channels, hid), jnp.float32) * 0.3,
        "g1": 1.0 + 0.1 * jax.random.normal(ks[1], (1, hid), jnp.float32),
        "b1": 0.1 * jax.random.normal(ks[2], (1, hid), jnp.float32),
        # depthwise conv: PyTorch (hid, 1, 3, 3) -> stored as (9, hid)
        "w2": jax.random.normal(ks[3], (9, hid), jnp.float32) * 0.3,
        "g2": 1.0 + 0.1 * jax.random.normal(ks[4], (1, hid), jnp.float32),
        "b2": 0.1 * jax.random.normal(ks[5], (1, hid), jnp.float32),
        # conv3: PyTorch (out, hid, 1, 1) -> stored as (hid, out)
        "w3": jax.random.normal(ks[6], (hid, out_channels), jnp.float32) * 0.3,
        "g3": 1.0 + 0.1 * jax.random.normal(ks[7], (1, out_channels), jnp.float32),
        "b3": 0.1 * jax.random.normal(ks[8], (1, out_channels), jnp.float32),
    }


if __name__ == "__main__":
    key = jax.random.PRNGKey(0)
    k_x, k_p = jax.random.split(key)

    # Small shapes consistent with the module: batch=2, channels=4, spatial=16.
    n, c_in, h, w = 2, 4, 16, 16
    expansion, stride = 4, 1
    c_out = 4
    use_residual = (stride == 1 and c_in == c_out)

    x = jax.random.normal(k_x, (n, c_in, h, w), jnp.float32)
    params = init_params(k_p, c_in, c_out, expansion)

    out = jax.block_until_ready(
        bottleneck_forward(x, params, stride=stride, use_residual=use_residual))
    ref = jax.block_until_ready(
        bottleneck_ref(x, params, stride=stride, use_residual=use_residual))

    assert out.shape == (n, c_out, h // stride, w // stride), out.shape
    np.testing.assert_allclose(np.asarray(out), np.asarray(ref),
                               rtol=1e-3, atol=1e-3)
    print("KERNEL_OK")
</pallas_src>

<mosaic_0001>
module attributes {stable_mosaic.version = 11 : i64} {
  func.func @_pointwise_bn_kernel(%arg0: i32, %arg1: i32, %arg2: memref<256x4xf32, #tpu.memory_space<vmem>>, %arg3: memref<4x128xf32, #tpu.memory_space<vmem>>, %arg4: memref<1x128xf32, #tpu.memory_space<vmem>>, %arg5: memref<1x128xf32, #tpu.memory_space<vmem>>, %arg6: memref<256x128xf32, #tpu.memory_space<vmem>>, %arg7: memref<1x128xf32, #tpu.memory_space<vmem>>, %arg8: memref<1x128xf32, #tpu.memory_space<vmem>>) attributes {dimension_semantics = [#tpu.dimension_semantics<arbitrary>, #tpu.dimension_semantics<arbitrary>], iteration_bounds = array<i64: 2, 2>, scalar_prefetch = 0 : i64, scratch_operands = 2 : i64, tpu.core_type = #tpu.core_type<tc>, window_params = [{transform_indices = @transform_0, window_bounds = array<i64: 256, 4>}, {pipeline_mode = #tpu.pipeline_mode<synchronous>, transform_indices = @transform_1, window_bounds = array<i64: 4, 128>}, {pipeline_mode = #tpu.pipeline_mode<synchronous>, transform_indices = @transform_2, window_bounds = array<i64: 1, 128>}, {pipeline_mode = #tpu.pipeline_mode<synchronous>, transform_indices = @transform_3, window_bounds = array<i64: 1, 128>}, {transform_indices = @transform_4, window_bounds = array<i64: 256, 128>}]} {
    %c0 = arith.constant 0 : index
    %c0_0 = arith.constant 0 : index
    %0 = vector.load %arg2[%c0, %c0_0] : memref<256x4xf32, #tpu.memory_space<vmem>>, vector<256x4xf32>
    %c0_1 = arith.constant 0 : index
    %c0_2 = arith.constant 0 : index
    %1 = vector.load %arg3[%c0_1, %c0_2] : memref<4x128xf32, #tpu.memory_space<vmem>>, vector<4x128xf32>
    %cst = arith.constant dense<0.000000e+00> : vector<256x128xf32>
    %2 = tpu.matmul %0, %1, %cst {dimension_numbers = #tpu.dot_dimension_numbers<[1], [0], [0], [1], [0, 0, 1, 1], [], []>} : vector<256x4xf32>, vector<4x128xf32>, vector<256x128xf32> -> vector<256x128xf32>
    %c0_i32 = arith.constant 0 : i32
    %3 = arith.cmpi eq, %arg0, %c0_i32 : i32
    %c0_i32_3 = arith.constant 0 : i32
    %4 = arith.cmpi eq, %arg1, %c0_i32_3 : i32
    %5 = arith.andi %3, %4 : i1
    %6 = arith.extui %5 : i1 to i32
    %c0_i32_4 = arith.constant 0 : i32
    %7 = arith.cmpi ne, %6, %c0_i32_4 : i32
    scf.if %7 {
      %cst_8 = arith.constant 0.000000e+00 : f32
      %14 = vector.broadcast %cst_8 : f32 to vector<1x128xf32>
      %c0_9 = arith.constant 0 : index
      %c0_10 = arith.constant 0 : index
      %15 = vector.load %arg7[%c0_9, %c0_10] : memref<1x128xf32, #tpu.memory_space<vmem>>, vector<1x128xf32>
      tpu.vector_store %arg7[%c0_9, %c0_10], %14 {strides = array<i32>} : memref<1x128xf32, #tpu.memory_space<vmem>>, vector<1x128xf32>,
      %cst_11 = arith.constant 0.000000e+00 : f32
      %16 = vector.broadcast %cst_11 : f32 to vector<1x128xf32>
      %c0_12 = arith.constant 0 : index
      %c0_13 = arith.constant 0 : index
      %17 = vector.load %arg8[%c0_12, %c0_13] : memref<1x128xf32, #tpu.memory_space<vmem>>, vector<1x128xf32>
      tpu.vector_store %arg8[%c0_12, %c0_13], %16 {strides = array<i32>} : memref<1x128xf32, #tpu.memory_space<vmem>>, vector<1x128xf32>,
    } else {
    }
    %c0_i32_5 = arith.constant 0 : i32
    %8 = arith.cmpi eq, %arg0, %c0_i32_5 : i32
    %9 = arith.extui %8 : i1 to i32
    %c0_i32_6 = arith.constant 0 : i32
    %10 = arith.cmpi ne, %9, %c0_i32_6 : i32
    scf.if %10 {
      %c0_8 = arith.constant 0 : index
      %c0_9 = arith.constant 0 : index
      %14 = vector.load %arg7[%c0_8, %c0_9] : memref<1x128xf32, #tpu.memory_space<vmem>>, vector<1x128xf32>
      %cst_10 = arith.constant dense<0.000000e+00> : vector<128xf32>
      %15 = vector.multi_reduction <add>, %2, %cst_10 [0] : vector<256x128xf32> to vector<128xf32>
      %16 = vector.shape_cast %15 : vector<128xf32> to vector<1x128xf32>
      %17 = arith.addf %14, %16 : vector<1x128xf32>
      %c0_11 = arith.constant 0 : index
      %c0_12 = arith.constant 0 : index
      %18 = vector.load %arg7[%c0_11, %c0_12] : memref<1x128xf32, #tpu.memory_space<vmem>>, vector<1x128xf32>
      tpu.vector_store %arg7[%c0_11, %c0_12], %17 {strides = array<i32>} : memref<1x128xf32, #tpu.memory_space<vmem>>, vector<1x128xf32>,
      %c0_13 = arith.constant 0 : index
      %c0_14 = arith.constant 0 : index
      %19 = vector.load %arg8[%c0_13, %c0_14] : memref<1x128xf32, #tpu.memory_space<vmem>>, vector<1x128xf32>
      %20 = arith.mulf %2, %2 : vector<256x128xf32>
      %cst_15 = arith.constant dense<0.000000e+00> : vector<128xf32>
      %21 = vector.multi_reduction <add>, %20, %cst_15 [0] : vector<256x128xf32> to vector<128xf32>
      %22 = vector.shape_cast %21 : vector<128xf32> to vector<1x128xf32>
      %23 = arith.addf %19, %22 : vector<1x128xf32>
      %c0_16 = arith.constant 0 : index
      %c0_17 = arith.constant 0 : index
      %24 = vector.load %arg8[%c0_16, %c0_17] : memref<1x128xf32, #tpu.memory_space<vmem>>, vector<1x128xf32>
      tpu.vector_store %arg8[%c0_16, %c0_17], %23 {strides = array<i32>} : memref<1x128xf32, #tpu.memory_space<vmem>>, vector<1x128xf32>,
    } else {
    }
    %c1_i32 = arith.constant 1 : i32
    %11 = arith.cmpi eq, %arg0, %c1_i32 : i32
    %12 = arith.extui %11 : i1 to i32
    %c0_i32_7 = arith.constant 0 : i32
    %13 = arith.cmpi ne, %12, %c0_i32_7 : i32
    scf.if %13 {
      %c0_8 = arith.constant 0 : index
      %c0_9 = arith.constant 0 : index
      %14 = vector.load %arg7[%c0_8, %c0_9] : memref<1x128xf32, #tpu.memory_space<vmem>>, vector<1x128xf32>
      %cst_10 = arith.constant 0.001953125 : f32
      %15 = vector.broadcast %cst_10 : f32 to vector<1x128xf32>
      %16 = arith.mulf %14, %15 : vector<1x128xf32>
      %c0_11 = arith.constant 0 : index
      %c0_12 = arith.constant 0 : index
      %17 = vector.load %arg8[%c0_11, %c0_12] : memref<1x128xf32, #tpu.memory_space<vmem>>, vector<1x128xf32>
      %cst_13 = arith.constant 0.001953125 : f32
      %18 = vector.broadcast %cst_13 : f32 to vector<1x128xf32>
      %19 = arith.mulf %17, %18 : vector<1x128xf32>
      %20 = arith.mulf %16, %16 : vector<1x128xf32>
      %21 = arith.subf %19, %20 : vector<1x128xf32>
      %cst_14 = arith.constant 9.99999974E-6 : f32
      %22 = vector.broadcast %cst_14 : f32 to vector<1x128xf32>
      %23 = arith.addf %21, %22 : vector<1x128xf32>
      %24 = math.rsqrt %23 : vector<1x128xf32>
      %c0_15 = arith.constant 0 : index
      %c0_16 = arith.constant 0 : index
      %25 = vector.load %arg4[%c0_15, %c0_16] : memref<1x128xf32, #tpu.memory_space<vmem>>, vector<1x128xf32>
      %26 = arith.mulf %24, %25 : vector<1x128xf32>
      %c0_17 = arith.constant 0 : index
      %c0_18 = arith.constant 0 : index
      %27 = vector.load %arg5[%c0_17, %c0_18] : memref<1x128xf32, #tpu.memory_space<vmem>>, vector<1x128xf32>
      %28 = arith.mulf %16, %26 : vector<1x128xf32>
      %29 = arith.subf %27, %28 : vector<1x128xf32>
      %30 = vector.broadcast %26 : vector<1x128xf32> to vector<256x128xf32>
      %31 = arith.mulf %2, %30 : vector<256x128xf32>
      %32 = vector.broadcast %29 : vector<1x128xf32> to vector<256x128xf32>
      %33 = arith.addf %31, %32 : vector<256x128xf32>
      %cst_19 = arith.constant 0.000000e+00 : f32
      %cst_20 = arith.constant 6.000000e+00 : f32
      %34 = vector.broadcast %cst_19 : f32 to vector<256x128xf32>
      %35 = arith.maximumf %34, %33 : vector<256x128xf32>
      %36 = vector.broadcast %cst_20 : f32 to vector<256x128xf32>
      %37 = arith.minimumf %36, %35 : vector<256x128xf32>
      %c0_21 = arith.constant 0 : index
      %c0_22 = arith.constant 0 : index
      %38 = vector.load %arg6[%c0_21, %c0_22] : memref<256x128xf32, #tpu.memory_space<vmem>>, vector<256x128xf32>
      tpu.vector_store %arg6[%c0_21, %c0_22], %37 {strides = array<i32>} : memref<256x128xf32, #tpu.memory_space<vmem>>, vector<256x128xf32>,
    } else {
    }
    return
  }
  func.func @transform_0(%arg0: i32, %arg1: i32) -> (i32, i32) {
    %c0_i32 = arith.constant 0 : i32
    %c0_i32_0 = arith.constant 0 : i32
    return %arg1, %c0_i32 : i32, i32
  }
  func.func @transform_1(%arg0: i32, %arg1: i32) -> (i32, i32) {
    %c0_i32 = arith.constant 0 : i32
    %c0_i32_0 = arith.constant 0 : i32
    %c0_i32_1 = arith.constant 0 : i32
    return %c0_i32, %c0_i32_0 : i32, i32
  }
  func.func @transform_2(%arg0: i32, %arg1: i32) -> (i32, i32) {
    %c0_i32 = arith.constant 0 : i32
    %c0_i32_0 = arith.constant 0 : i32
    %c0_i32_1 = arith.constant 0 : i32
    return %c0_i32, %c0_i32_0 : i32, i32
  }
  func.func @transform_3(%arg0: i32, %arg1: i32) -> (i32, i32) {
    %c0_i32 = arith.constant 0 : i32
    %c0_i32_0 = arith.constant 0 : i32
    %c0_i32_1 = arith.constant 0 : i32
    return %c0_i32, %c0_i32_0 : i32, i32
  }
  func.func @transform_4(%arg0: i32, %arg1: i32) -> (i32, i32) {
    %0 = arith.muli %arg1, %arg0 : i32
    %c0_i32 = arith.constant 0 : i32
    %c0_i32_0 = arith.constant 0 : i32
    return %0, %c0_i32 : i32, i32
  }
}

</mosaic_0001>

<bundles_post_ra>
// kernel: tpu_custom_call.1
= control target key start
LH: loop header
LB: loop body
LE: loop exit
PB: predicated region body
PF: predicated region fallthrough
CT: control target
= control target key end

     0   :  { %9 = vsyncpa [#allocation5], 0  ;;  %s1832_s0 = inlined_call_operand.vmem [shape: f32[512,4], index: 0, kind: input, shape index: {}]   ;;  %s1833_s1 = inlined_call_operand.vmem [shape: f32[4,128], index: 1, kind: input, shape index: {}]   ;;  %s1834_s2 = inlined_call_operand.vmem [shape: f32[1,128], index: 2, kind: input, shape index: {}]   ;;  %s1835_s3 = inlined_call_operand.vmem [shape: f32[1,128], index: 3, kind: input, shape index: {}]   ;;  %s1836_s4 = inlined_call_operand.hbm [shape: f32[512,128], index: 4, kind: output, shape index: {}]  }
   0x1   :  { %11 = vsyncpa [#allocation5 + $0x1], 0  ;;  %s1308_s15 = smov 0   ;;  %s1310_s16 = smov 0  }
   0x2   :  { %s1312_s17 = smov 0   ;;  %s1314_s18 = smov 0  }
   0x3   :  { %s1316_s19 = smov 0   ;;  %s1318_s20 = smov 0  }
   0x4   :  { %s1320_s21 = smov 0   ;;  %s1322_s22 = smov 0  }
   0x5 LB: > { %s973_s23 = sadd.s32 4294967295, %s1277_s22   ;;  %s974_s24 = sadd.s32 4294967294, %s1277_s22   ;;  %s1277_s22 = sphi %s1322_s22, %s17_s22   ;;  %s1273_s21 = sphi %s1320_s21, %s1846_s21   ;;  %s1269_s20 = sphi %s1318_s20, %s1845_s20   ;;  %s1265_s19 = sphi %s1316_s19, %s1844_s19   ;;  %s1261_s18 = sphi %s1314_s18, %s1843_s18   ;;  %s1257_s17 = sphi %s1312_s17, %s1842_s17   ;;  %s1253_s16 = sphi %s1310_s16, %s1841_s16   ;;  %s1249_s15 = sphi %s1308_s15, %s1840_s15  }
   0x6   : > { %s26_s25 = sadd.s32 1, %s1269_s20  ;;  %s29_s26 = sadd.s32 1, %s1273_s21 }
   0x7   : > { %p27_p0 = scmp.ge.s32.totalorder %s26_s25, 2  ;;  %s122_s27 = smul.u32 %s1269_s20, %s1273_s21 }
   0x8   : > { %p137_p1 = scmp.ne.s32.totalorder %s1257_s17, %s1253_s16  ;;  %p138_p2 = scmp.eq.s32.totalorder %s973_s23, 3 }
   0x9   : > { %s1848_s25 = smov (%p27_p0, %s26_s25), 0  ;;  %s1850_s26 = smov (!%p27_p0, %s29_s26), %s1273_s21 }
   0xa   : > { %p143_p3 = scmp.ne.s32.totalorder %s1253_s16, %s1249_s15  ;;  %p31_p4 = scmp.ge.s32.totalorder %s1850_s26, 2 }
   0xb   : > { %p144_p5 = scmp.eq.s32.totalorder %s974_s24, 3  ;;  %p1361_p6 = por %p138_p2, %p137_p1 }
   0xc   : > { %p977_p7 = scmp.ge.s32.totalorder %s1277_s22, 1  ;;  %s1852_s26 = smov (%p31_p4, %s1850_s26), 0 }
   0xd   : > { %p1368_p8 = por %p144_p5, %p143_p3  ;;  %p180_p9 = scmp.lt.s32.totalorder %s1277_s22, 5 }
   0xe   : > { %s123_s30 = smul.u32 %s1852_s26, %s1848_s25  ;;  %s127_s6 = sadd.s32 1, %s1257_s17 }
   0xf   : > { %p181_p10 = pnand %p977_p7, %p180_p9 }
  0x10   : > { %s124_s5 = ssub.s32 %s122_s27, %s123_s30  ;;  %s203_s8 = sand.u32 (!%p181_p10), 1, %s1253_s16   ;;  %v246_v0 = vld [vmem:[%s1833_s1] sm:$0xf] (!%p181_p10)  ;;  %vm344_vm0 = vcmask (!%p181_p10), 1043456   ;;  %vm247_vm1 = vcmask (!%p181_p10), 31744  }
  0x11   : > { %p125_p11 = scmp.eq.s32.totalorder %s124_s5, 0  ;;  %184 = sbr.rel (%p181_p10) target bundleno = 443 (0x1bb), region = 36  ;;  %1055 = vmatprep.subr.msk.mxu0 (!%p181_p10), %vm344_vm0, %v246_v0  ;;  %1105 = vmatprep.subr.msk.mxu1 (!%p181_p10), %vm344_vm0, %v246_v0 }
  0x12   : > { %s979_s11 = sshll.u32 (!%p181_p10), %s1261_s18, 5  ;;  %s1386_s12 = sshll.u32 (!%p181_p10), %s203_s8, 8  ;;  %1056 = vmatpush3.msk.msra.mxu0 (!%p181_p10), %vm344_vm0, %v246_v0  ;;  %1106 = vmatpush3.msk.msra.mxu1 (!%p181_p10), %vm344_vm0, %v246_v0 }
  0x13   : > { %s1377_s7 = scalar_select %p125_p11, %s1257_s17, %s127_s6  }
  0x14   : > { %p207_p12 = scmp.lt.s32.totalorder (!%p181_p10), %s979_s11, 63  ;;  %p573_p13 = scmp.eq.s32.totalorder (!%p181_p10), %s1265_s19, 0 }
  0x15   : > { %p574_p0 = scmp.eq.s32.totalorder (!%p181_p10), %s1261_s18, 0  ;;  %s1528_s30 = scalar_lea.vmem (!%p181_p10), [#allocation4], %s1386_s12 }
  0x17   : > { %p1459_p1 = pnand (!%p181_p10), %p574_p0, %p573_p13 }
  0x18   : > { %s1854_s11 = smov (!%p207_p12, %s979_s11), 63 }
  0x19   : > { %s980_s13 = sshll.u32 %s1854_s11, 3 }
  0x1a   : > { %s1391_s24 = scalar_lea.vmem %s1832_s0, %s980_s13 }
  0x1b   : > { %v214_v1 = vld [vmem:[%s1391_s24] sm:$0xff]  ;;  %v215_v3 = vld [vmem:[%s1391_s24 + $0x8] sm:$0xff]  ;;  %v216_v5 = vld [vmem:[%s1391_s24 + $0x10] sm:$0xff] }
  0x1c   : > { %v230_v2 = vld [vmem:[%s1391_s24 + $0x80] sm:$0xff]  ;;  %1057 = vmatprep.mubr.msk.f32.mxu0 %vm247_vm1, %v214_v1  ;;  %v231_v4 = vld [vmem:[%s1391_s24 + $0x88] sm:$0xff]  ;;  %v232_v6 = vld [vmem:[%s1391_s24 + $0x90] sm:$0xff]  ;;  %v1279_v1 = vmov (!%p1459_p1), 0.0  }
  0x1d   : > { %1081 = vmatprep.mubr.msk.f32.mxu1 %vm247_vm1, %v230_v2  ;;  %1058 = vmatmul.mubr.msk.f32.vlgmr.msra.gmra.mrb[0].mxu0 %vm247_vm1, %v215_v3  ;;  %v217_v7 = vld [vmem:[%s1391_s24 + $0x18] sm:$0xff]  ;;  %v218_v9 = vld [vmem:[%s1391_s24 + $0x20] sm:$0xff]  ;;  %v219_v11 = vld [vmem:[%s1391_s24 + $0x28] sm:$0xff]  ;;  %579 = vst [vmem:[#allocation2] sm:$0x1] (!%p1459_p1), %v1279_v1 }
  0x1e   : > { %1082 = vmatmul.mubr.msk.f32.vlgmr.msra.gmra.mrb[0].mxu1 %vm247_vm1, %v231_v4  ;;  %1060 = vmatprep.mubr.msk.f32.mxu0 %vm247_vm1, %v216_v5  ;;  %v233_v8 = vld [vmem:[%s1391_s24 + $0x98] sm:$0xff]  ;;  %v234_v10 = vld [vmem:[%s1391_s24 + $0xa0] sm:$0xff]  ;;  %v235_v12 = vld [vmem:[%s1391_s24 + $0xa8] sm:$0xff]  ;;  %580 = vst [vmem:[#allocation3] sm:$0x1] (!%p1459_p1), %v1279_v1 }
  0x1f   : > { %1084 = vmatprep.mubr.msk.f32.mxu1 %vm247_vm1, %v232_v6  ;;  %v220_v13 = vld [vmem:[%s1391_s24 + $0x30] sm:$0xff]  ;;  %v221_v15 = vld [vmem:[%s1391_s24 + $0x38] sm:$0xff]  ;;  %v222_v17 = vld [vmem:[%s1391_s24 + $0x40] sm:$0xff] }
  0x20   : > { %v236_v14 = vld [vmem:[%s1391_s24 + $0xb0] sm:$0xff]  ;;  %v237_v16 = vld [vmem:[%s1391_s24 + $0xb8] sm:$0xff]  ;;  %v238_v18 = vld [vmem:[%s1391_s24 + $0xc0] sm:$0xff] }
  0x21   : > { %1061 = vmatmul.mubr.msk.f32.gmra.mrb[2].mxu0 %vm247_vm1, %v217_v7  ;;  %v223_v19 = vld [vmem:[%s1391_s24 + $0x48] sm:$0xff]  ;;  %v224_v21 = vld [vmem:[%s1391_s24 + $0x50] sm:$0xff]  ;;  %v225_v23 = vld [vmem:[%s1391_s24 + $0x58] sm:$0xff] }
  0x22   : > { %1085 = vmatmul.mubr.msk.f32.gmra.mrb[2].mxu1 %vm247_vm1, %v233_v8  ;;  %1063 = vmatprep.mubr.msk.f32.mxu0 %vm247_vm1, %v218_v9  ;;  %v239_v20 = vld [vmem:[%s1391_s24 + $0xc8] sm:$0xff]  ;;  %v240_v22 = vld [vmem:[%s1391_s24 + $0xd0] sm:$0xff]  ;;  %v241_v24 = vld [vmem:[%s1391_s24 + $0xd8] sm:$0xff] }
  0x23   : > { %1087 = vmatprep.mubr.msk.f32.mxu1 %vm247_vm1, %v234_v10  ;;  %v226_v25 = vld [vmem:[%s1391_s24 + $0x60] sm:$0xff]  ;;  %v227_v27 = vld [vmem:[%s1391_s24 + $0x68] sm:$0xff]  ;;  %v228_v29 = vld [vmem:[%s1391_s24 + $0x70] sm:$0xff] }
  0x24   : > { %v242_v26 = vld [vmem:[%s1391_s24 + $0xe0] sm:$0xff]  ;;  %v243_v28 = vld [vmem:[%s1391_s24 + $0xe8] sm:$0xff]  ;;  %v244_v30 = vld [vmem:[%s1391_s24 + $0xf0] sm:$0xff] }
  0x25   : > { %1064 = vmatmul.mubr.msk.f32.gmra.mrb[4].mxu0 %vm247_vm1, %v219_v11  ;;  %v229_v31 = vld [vmem:[%s1391_s24 + $0x78] sm:$0xff] }
  0x26   : > { %1088 = vmatmul.mubr.msk.f32.gmra.mrb[4].mxu1 %vm247_vm1, %v235_v12  ;;  %1066 = vmatprep.mubr.msk.f32.mxu0 %vm247_vm1, %v220_v13  ;;  %v245_v32 = vld [vmem:[%s1391_s24 + $0xf8] sm:$0xff] }
  0x27   : > { %1090 = vmatprep.mubr.msk.f32.mxu1 %vm247_vm1, %v236_v14 }
  0x29   : > { %1067 = vmatmul.mubr.msk.f32.gmra.mrb[6].mxu0 %vm247_vm1, %v221_v15 }
  0x2a   : > { %1091 = vmatmul.mubr.msk.f32.gmra.mrb[6].mxu1 %vm247_vm1, %v237_v16  ;;  %1069 = vmatprep.mubr.msk.f32.mxu0 %vm247_vm1, %v222_v17 }
  0x2b   : > { %1093 = vmatprep.mubr.msk.f32.mxu1 %vm247_vm1, %v238_v18 }
  0x2d   : > { %1070 = vmatmul.mubr.msk.f32.gmra.mrb[8].mxu0 %vm247_vm1, %v223_v19 }
  0x2e   : > { %1094 = vmatmul.mubr.msk.f32.gmra.mrb[8].mxu1 %vm247_vm1, %v239_v20  ;;  %1072 = vmatprep.mubr.msk.f32.mxu0 %vm247_vm1, %v224_v21 }
  0x2f   : > { %1096 = vmatprep.mubr.msk.f32.mxu1 %vm247_vm1, %v240_v22 }
  0x31   : > { %1073 = vmatmul.mubr.msk.f32.gmra.mrb[10].mxu0 %vm247_vm1, %v225_v23 }
  0x32   : > { %1097 = vmatmul.mubr.msk.f32.gmra.mrb[10].mxu1 %vm247_vm1, %v241_v24  ;;  %1075 = vmatprep.mubr.msk.f32.mxu0 %vm247_vm1, %v226_v25 }
  0x33   : > { %1099 = vmatprep.mubr.msk.f32.mxu1 %vm247_vm1, %v242_v26 }
  0x35   : > { %1076 = vmatmul.mubr.msk.f32.gmra.mrb[12].mxu0 %vm247_vm1, %v227_v27 }
  0x36   : > { %1100 = vmatmul.mubr.msk.f32.gmra.mrb[12].mxu1 %vm247_vm1, %v243_v28  ;;  %1078 = vmatprep.mubr.msk.f32.mxu0 %vm247_vm1, %v228_v29 }
  0x37   : > { %1102 = vmatprep.mubr.msk.f32.mxu1 %vm247_vm1, %v244_v30 }
  0x39   : > { %1079 = vmatmul.mubr.msk.f32.gmra.mrb[14].mxu0 %vm247_vm1, %v229_v31 }
  0x3a   : > { %1103 = vmatmul.mubr.msk.f32.gmra.mrb[14].mxu1 %vm247_vm1, %v245_v32 }
  0xf0   : > { %v1463_v33 = vpop.f32.mrb[0].mxu0 }
  0xf1   : > { %v1465_v34 = vpop.f32.mrb[0].mxu1  ;;  %v1467_v35 = vpop.f32.mrb[1].mxu0 }
  0xf2   : > { %v1469_v36 = vpop.f32.mrb[1].mxu1 }
  0xf4   : > { %v1471_v37 = vpop.f32.mrb[2].mxu0 }
  0xf5   : > { %v1473_v38 = vpop.f32.mrb[2].mxu1  ;;  %v1475_v39 = vpop.f32.mrb[3].mxu0 }
  0xf6   : > { %v1477_v40 = vpop.f32.mrb[3].mxu1 }
  0xf8   : > { %v1479_v41 = vpop.f32.mrb[4].mxu0 }
  0xf9   : > { %v1481_v42 = vpop.f32.mrb[4].mxu1  ;;  %v1483_v43 = vpop.f32.mrb[5].mxu0 }
  0xfa   : > { %v1485_v44 = vpop.f32.mrb[5].mxu1 }
  0xfc   : > { %v1487_v45 = vpop.f32.mrb[6].mxu0 }
  0xfd   : > { %v1489_v46 = vpop.f32.mrb[6].mxu1  ;;  %v1491_v47 = vpop.f32.mrb[7].mxu0 }
  0xfe   : > { %v1493_v48 = vpop.f32.mrb[7].mxu1 }
 0x100   : > { %v1495_v49 = vpop.f32.mrb[8].mxu0 }
 0x101   : > { %v1497_v50 = vpop.f32.mrb[8].mxu1  ;;  %v1499_v51 = vpop.f32.mrb[9].mxu0 }
 0x102   : > { %v1501_v52 = vpop.f32.mrb[9].mxu1 }
 0x104   : > { %v1503_v53 = vpop.f32.mrb[10].mxu0 }
 0x105   : > { %v1505_v54 = vpop.f32.mrb[10].mxu1  ;;  %v1507_v55 = vpop.f32.mrb[11].mxu0 }
 0x106   : > { %v1509_v56 = vpop.f32.mrb[11].mxu1 }
 0x108   : > { %v1511_v57 = vpop.f32.mrb[12].mxu0  ;;  %578 = sbr.rel (%p1459_p1) target bundleno = 271 (0x10f), region = 40 }
 0x109   : > { %v1513_v58 = vpop.f32.mrb[12].mxu1  ;;  %v1515_v59 = vpop.f32.mrb[13].mxu0 }
 0x10a   : > { %v1517_v60 = vpop.f32.mrb[13].mxu1 }
 0x10c   : > { %v1519_v61 = vpop.f32.mrb[14].mxu0 }
 0x10d   : > { %v1521_v62 = vpop.f32.mrb[14].mxu1  ;;  %v1523_v63 = vpop.f32.mrb[15].mxu0 }
 0x10e   : > { %v1525_v0 = vpop.f32.mrb[15].mxu1 }
 0x10f PF: > { %p1014_p2 = scmp.ne.s32.totalorder %s1265_s19, 0 }
 0x110   : > { %v585_v2 = vadd.f32 (!%p1014_p2), %v1463_v33, %v1467_v35  ;;  %v625_v5 = vmul.f32 (!%p1014_p2), %v1467_v35, %v1467_v35  ;;  %v626_v6 = vmul.f32 (!%p1014_p2), %v1463_v33, %v1463_v33  ;;  %v627_v8 = vmul.f32 (!%p1014_p2), %v1475_v39, %v1475_v39 }
 0x111   : > { %583 = sbr.rel (%p1014_p2) target bundleno = 351 (0x15f), region = 44  ;;  %v628_v10 = vmul.f32 (!%p1014_p2), %v1471_v37, %v1471_v37  ;;  %v629_v13 = vmul.f32 (!%p1014_p2), %v1483_v43, %v1483_v43  ;;  %v630_v16 = vmul.f32 (!%p1014_p2), %v1479_v41, %v1479_v41  ;;  %v631_v19 = vmul.f32 (!%p1014_p2), %v1491_v47, %v1491_v47 }
 0x112   : > { %v586_v3 = vadd.f32 (!%p1014_p2), %v585_v2, %v1475_v39  ;;  %v657_v11 = vadd.f32 (!%p1014_p2), %v626_v6, %v625_v5  ;;  %v632_v22 = vmul.f32 (!%p1014_p2), %v1487_v45, %v1487_v45  ;;  %v633_v25 = vmul.f32 (!%p1014_p2), %v1499_v51, %v1499_v51 }
 0x113   : > { %v634_v28 = vmul.f32 (!%p1014_p2), %v1495_v49, %v1495_v49  ;;  %v635_v31 = vmul.f32 (!%p1014_p2), %v1507_v55, %v1507_v55  ;;  %v636_v2 = vmul.f32 (!%p1014_p2), %v1503_v53, %v1503_v53  ;;  %v637_v5 = vmul.f32 (!%p1014_p2), %v1515_v59, %v1515_v59 }
 0x114   : > { %v587_v4 = vadd.f32 (!%p1014_p2), %v1471_v37, %v586_v3  ;;  %v658_v14 = vadd.f32 (!%p1014_p2), %v657_v11, %v627_v8  ;;  %v638_v8 = vmul.f32 (!%p1014_p2), %v1511_v57, %v1511_v57  ;;  %v639_v11 = vmul.f32 (!%p1014_p2), %v1523_v63, %v1523_v63 }
 0x116   : > { %v588_v7 = vadd.f32 (!%p1014_p2), %v587_v4, %v1483_v43  ;;  %v659_v17 = vadd.f32 (!%p1014_p2), %v658_v14, %v628_v10  ;;  %v640_v14 = vmul.f32 (!%p1014_p2), %v1519_v61, %v1519_v61 }
 0x118   : > { %v589_v9 = vadd.f32 %v1479_v41, %v588_v7  ;;  %v660_v20 = vadd.f32 %v659_v17, %v629_v13  ;;  %v641_v17 = vmul.f32 %v1469_v36, %v1469_v36 }
 0x11a   : > { %v590_v12 = vadd.f32 %v589_v9, %v1491_v47  ;;  %v661_v23 = vadd.f32 %v660_v20, %v630_v16  ;;  %v642_v20 = vmul.f32 %v1465_v34, %v1465_v34 }
 0x11c   : > { %v591_v15 = vadd.f32 %v1487_v45, %v590_v12  ;;  %v662_v26 = vadd.f32 %v661_v23, %v631_v19  ;;  %v643_v23 = vmul.f32 %v1477_v40, %v1477_v40 }
 0x11e   : > { %v592_v18 = vadd.f32 %v591_v15, %v1499_v51  ;;  %v663_v29 = vadd.f32 %v662_v26, %v632_v22  ;;  %v644_v26 = vmul.f32 %v1473_v38, %v1473_v38 }
 0x120   : > { %v593_v21 = vadd.f32 %v1495_v49, %v592_v18  ;;  %v664_v32 = vadd.f32 %v663_v29, %v633_v25  ;;  %v645_v29 = vmul.f32 %v1485_v44, %v1485_v44 }
 0x122   : > { %v594_v24 = vadd.f32 %v593_v21, %v1507_v55  ;;  %v665_v3 = vadd.f32 %v664_v32, %v634_v28  ;;  %v646_v32 = vmul.f32 %v1481_v42, %v1481_v42 }
 0x124   : > { %v595_v27 = vadd.f32 %v1503_v53, %v594_v24  ;;  %v666_v6 = vadd.f32 %v665_v3, %v635_v31  ;;  %v647_v3 = vmul.f32 %v1493_v48, %v1493_v48 }
 0x126   : > { %v596_v30 = vadd.f32 %v595_v27, %v1515_v59  ;;  %v667_v9 = vadd.f32 %v666_v6, %v636_v2  ;;  %v648_v6 = vmul.f32 %v1489_v46, %v1489_v46 }
 0x128   : > { %v597_v1 = vadd.f32 %v1511_v57, %v596_v30  ;;  %v668_v12 = vadd.f32 %v667_v9, %v637_v5  ;;  %v649_v9 = vmul.f32 %v1501_v52, %v1501_v52 }
 0x12a   : > { %v598_v4 = vadd.f32 %v597_v1, %v1523_v63  ;;  %v669_v15 = vadd.f32 %v668_v12, %v638_v8  ;;  %v650_v12 = vmul.f32 %v1497_v50, %v1497_v50 }
 0x12c   : > { %v599_v7 = vadd.f32 %v1519_v61, %v598_v4  ;;  %v670_v18 = vadd.f32 %v669_v15, %v639_v11  ;;  %v651_v15 = vmul.f32 %v1509_v56, %v1509_v56 }
 0x12e   : > { %v600_v10 = vadd.f32 %v599_v7, %v1469_v36  ;;  %v671_v21 = vadd.f32 %v670_v18, %v640_v14  ;;  %v652_v18 = vmul.f32 %v1505_v54, %v1505_v54 }
 0x130   : > { %v601_v13 = vadd.f32 %v1465_v34, %v600_v10  ;;  %v672_v24 = vadd.f32 %v671_v21, %v641_v17  ;;  %v653_v21 = vmul.f32 %v1517_v60, %v1517_v60 }
 0x132   : > { %v602_v16 = vadd.f32 %v601_v13, %v1477_v40  ;;  %v673_v27 = vadd.f32 %v672_v24, %v642_v20  ;;  %v654_v24 = vmul.f32 %v1513_v58, %v1513_v58 }
 0x134   : > { %v603_v19 = vadd.f32 %v1473_v38, %v602_v16  ;;  %v674_v30 = vadd.f32 %v673_v27, %v643_v23  ;;  %v655_v27 = vmul.f32 %v1525_v0, %v1525_v0 }
 0x136   : > { %v604_v22 = vadd.f32 %v603_v19, %v1485_v44  ;;  %v675_v1 = vadd.f32 %v674_v30, %v644_v26  ;;  %v656_v30 = vmul.f32 %v1521_v62, %v1521_v62 }
 0x138   : > { %v605_v25 = vadd.f32 %v1481_v42, %v604_v22  ;;  %v676_v4 = vadd.f32 %v675_v1, %v645_v29 }
 0x13a   : > { %v606_v28 = vadd.f32 %v605_v25, %v1493_v48  ;;  %v677_v7 = vadd.f32 %v676_v4, %v646_v32 }
 0x13c   : > { %v607_v31 = vadd.f32 %v1489_v46, %v606_v28  ;;  %v678_v10 = vadd.f32 %v677_v7, %v647_v3 }
 0x13e   : > { %v608_v2 = vadd.f32 %v607_v31, %v1501_v52  ;;  %v679_v13 = vadd.f32 %v678_v10, %v648_v6 }
 0x140   : > { %v609_v5 = vadd.f32 %v1497_v50, %v608_v2  ;;  %v680_v16 = vadd.f32 %v679_v13, %v649_v9  ;;  %v624_v13 = vld [vmem:[#allocation3] sm:$0x1] }
 0x142   : > { %v610_v8 = vadd.f32 %v609_v5, %v1509_v56  ;;  %v681_v19 = vadd.f32 %v680_v16, %v650_v12  ;;  %v584_v5 = vld [vmem:[#allocation2] sm:$0x1] }
 0x144   : > { %v611_v11 = vadd.f32 %v1505_v54, %v610_v8  ;;  %v682_v22 = vadd.f32 %v681_v19, %v651_v15 }
 0x146   : > { %v612_v14 = vadd.f32 %v611_v11, %v1517_v60  ;;  %v683_v25 = vadd.f32 %v682_v22, %v652_v18 }
 0x148   : > { %v613_v17 = vadd.f32 %v1513_v58, %v612_v14  ;;  %v684_v28 = vadd.f32 %v683_v25, %v653_v21 }
 0x14a   : > { %v614_v20 = vadd.f32 %v613_v17, %v1525_v0  ;;  %v685_v31 = vadd.f32 %v684_v28, %v654_v24 }
 0x14c   : > { %v615_v23 = vadd.f32 %v1521_v62, %v614_v20  ;;  %v686_v1 = vadd.f32 %v685_v31, %v655_v27 }
 0x14e   : > { %v616_v26 = vrot.slane %v615_v23, 4  ;;  %v687_v3 = vadd.f32 %v686_v1, %v656_v30 }
 0x150   : > { %v617_v29 = vadd.f32 %v616_v26, %v615_v23  ;;  %v688_v6 = vrot.slane %v687_v3, 4 }
 0x152   : > { %v618_v32 = vrot.slane %v617_v29, 2  ;;  %v689_v8 = vadd.f32 %v688_v6, %v687_v3 }
 0x154   : > { %v619_v2 = vadd.f32 %v618_v32, %v617_v29  ;;  %v690_v10 = vrot.slane %v689_v8, 2 }
 0x156   : > { %v620_v4 = vrot.slane %v619_v2, 1  ;;  %v691_v11 = vadd.f32 %v690_v10, %v689_v8 }
 0x158   : > { %v621_v7 = vadd.f32 %v620_v4, %v619_v2  ;;  %v692_v12 = vrot.slane %v691_v11, 1 }
 0x15a   : > { %v622_v9 = vadd.f32 %v621_v7, %v584_v5  ;;  %v693_v14 = vadd.f32 %v692_v12, %v691_v11 }
 0x15c   : > { %623 = vst [vmem:[#allocation2] sm:$0x1] %v622_v9  ;;  %v694_v15 = vadd.f32 %v693_v14, %v624_v13 }
 0x15e   : > { %695 = vst [vmem:[#allocation3] sm:$0x1] %v694_v15 }
 0x15f PF: > { %p1015_p3 = scmp.ne.s32.totalorder %s1265_s19, 1 }
 0x160   : > { %v714_v23 = vlaneseq (!%p1015_p3)  ;;  %v708_v25 = vld [vmem:[%s1834_s2] sm:$0x1] (!%p1015_p3) }
 0x161   : > { %699 = sbr.rel (%p1015_p3) target bundleno = 417 (0x1a1), region = 48  ;;  %v710_v29 = vld [vmem:[%s1835_s3] sm:$0x1] (!%p1015_p3) }
 0x162   : > { %v715_v24 = vshrl.u32 (!%p1015_p3), %v714_v23, 7 }
 0x163   : > { %v700_v16 = vld [vmem:[#allocation2] sm:$0x1] (!%p1015_p3) }
 0x164   : > { %v701_v18 = vmul.f32 (!%p1015_p3), 0.001953125, %v700_v16  ;;  %v716_v26 = vsub.s32 (!%p1015_p3), 0, %v715_v24 }
 0x165   : > { %v702_v17 = vld [vmem:[#allocation3] sm:$0x1] (!%p1015_p3) }
 0x166   : > { %v703_v19 = vmul.f32 (!%p1015_p3), 0.001953125, %v702_v17  ;;  %v704_v20 = vmul.f32 (!%p1015_p3), %v701_v18, %v701_v18 }
 0x168   : > { %v705_v21 = vsub.f32 %v703_v19, %v704_v20 }
 0x16a   : > { %v706_v22 = vadd.f32 1e-05, %v705_v21 }
 0x16c   : > { %1181 = vrsqrt.f32 %v706_v22 }
 0x176   : > { %v1182_v27 = vpop.eup %1181 }
 0x177   : > { %v709_v28 = vmul.f32 %v1182_v27, %v708_v25 }
 0x179   : > { %v711_v30 = vmul.f32 %v709_v28, %v701_v18  ;;  %v1636_v31 = vrot.slane %v709_v28, %v716_v26 }
 0x17b   : > { %v712_v32 = vsub.f32 %v710_v29, %v711_v30  ;;  %v719_v1 = vmul.f32 %v1636_v31, %v1467_v35  ;;  %v720_v2 = vmul.f32 %v1463_v33, %v1636_v31  ;;  %v721_v3 = vmul.f32 %v1636_v31, %v1475_v39 }
 0x17c   : > { %v722_v4 = vmul.f32 %v1471_v37, %v1636_v31  ;;  %v723_v5 = vmul.f32 %v1636_v31, %v1483_v43  ;;  %v724_v6 = vmul.f32 %v1479_v41, %v1636_v31  ;;  %v725_v7 = vmul.f32 %v1636_v31, %v1491_v47 }
 0x17d   : > { %v1652_v8 = vrot.slane %v712_v32, %v716_v26  ;;  %v726_v33 = vmul.f32 %v1487_v45, %v1636_v31  ;;  %v727_v35 = vmul.f32 %v1636_v31, %v1499_v51  ;;  %v728_v37 = vmul.f32 %v1495_v49, %v1636_v31 }
 0x17e   : > { %v729_v39 = vmul.f32 %v1636_v31, %v1507_v55  ;;  %v730_v41 = vmul.f32 %v1503_v53, %v1636_v31  ;;  %v731_v43 = vmul.f32 %v1636_v31, %v1515_v59  ;;  %v732_v47 = vmul.f32 %v1511_v57, %v1636_v31 }
 0x17f   : > { %v757_v45 = vadd.f32 %v1652_v8, %v719_v1  ;;  %v758_v9 = vadd.f32 %v1652_v8, %v720_v2  ;;  %v759_v51 = vadd.f32 %v1652_v8, %v721_v3  ;;  %v760_v49 = vadd.f32 %v1652_v8, %v722_v4 }
 0x180   : > { %v761_v10 = vadd.f32 %v1652_v8, %v723_v5  ;;  %v762_v55 = vadd.f32 %v1652_v8, %v724_v6  ;;  %v763_v53 = vadd.f32 %v1652_v8, %v725_v7  ;;  %v764_v11 = vadd.f32 %v1652_v8, %v726_v33 }
 0x181   : > { %v789_v59 = vmax.f32 %v757_v45, 0.0  ;;  %v790_v12 = vmax.f32 %v758_v9, 0.0  ;;  %v791_v57 = vmax.f32 %v759_v51, 0.0  ;;  %v792_v13 = vmax.f32 %v760_v49, 0.0 }
 0x182   : > { %v793_v14 = vmax.f32 %v761_v10, 0.0  ;;  %v794_v15 = vmax.f32 %v762_v55, 0.0  ;;  %v795_v16 = vmax.f32 %v763_v53, 0.0  ;;  %v796_v17 = vmax.f32 %v764_v11, 0.0 }
 0x183   : > { %v821_v18 = vmin.f32 %v789_v59, 6.0  ;;  %v822_v19 = vmin.f32 %v790_v12, 6.0  ;;  %v823_v20 = vmin.f32 %v791_v57, 6.0  ;;  %v824_v21 = vmin.f32 %v792_v13, 6.0 }
 0x184   : > { %v825_v22 = vmin.f32 %v793_v14, 6.0  ;;  %v826_v23 = vmin.f32 %v794_v15, 6.0  ;;  %v827_v24 = vmin.f32 %v795_v16, 6.0  ;;  %v828_v25 = vmin.f32 %v796_v17, 6.0 }
 0x185   : > { %853 = vst [vmem:[%s1528_s30] sm:$0xff] %v821_v18  ;;  %854 = vst [vmem:[%s1528_s30 + $0x8] sm:$0xff] %v822_v19  ;;  %v765_v26 = vadd.f32 %v1652_v8, %v727_v35  ;;  %v766_v27 = vadd.f32 %v1652_v8, %v728_v37  ;;  %v767_v28 = vadd.f32 %v1652_v8, %v729_v39 }
 0x186   : > { %855 = vst [vmem:[%s1528_s30 + $0x10] sm:$0xff] %v823_v20  ;;  %856 = vst [vmem:[%s1528_s30 + $0x18] sm:$0xff] %v824_v21  ;;  %v768_v29 = vadd.f32 %v1652_v8, %v730_v41  ;;  %v769_v30 = vadd.f32 %v1652_v8, %v731_v43  ;;  %v770_v32 = vadd.f32 %v1652_v8, %v732_v47 }
 0x187   : > { %857 = vst [vmem:[%s1528_s30 + $0x20] sm:$0xff] %v825_v22  ;;  %858 = vst [vmem:[%s1528_s30 + $0x28] sm:$0xff] %v826_v23  ;;  %v733_v1 = vmul.f32 %v1636_v31, %v1523_v63  ;;  %v734_v2 = vmul.f32 %v1519_v61, %v1636_v31  ;;  %v797_v3 = vmax.f32 %v765_v26, 0.0  ;;  %v798_v4 = vmax.f32 %v766_v27, 0.0 }
 0x188   : > { %859 = vst [vmem:[%s1528_s30 + $0x30] sm:$0xff] %v827_v24  ;;  %860 = vst [vmem:[%s1528_s30 + $0x38] sm:$0xff] %v828_v25  ;;  %v799_v5 = vmax.f32 %v767_v28, 0.0  ;;  %v800_v6 = vmax.f32 %v768_v29, 0.0  ;;  %v801_v7 = vmax.f32 %v769_v30, 0.0  ;;  %v802_v33 = vmax.f32 %v770_v32, 0.0 }
 0x189   : > { %v771_v35 = vadd.f32 %v1652_v8, %v733_v1  ;;  %v772_v37 = vadd.f32 %v1652_v8, %v734_v2  ;;  %v829_v39 = vmin.f32 %v797_v3, 6.0  ;;  %v830_v63 = vmin.f32 %v798_v4, 6.0 }
 0x18a   : > { %v831_v41 = vmin.f32 %v799_v5, 6.0  ;;  %v832_v61 = vmin.f32 %v800_v6, 6.0  ;;  %v833_v43 = vmin.f32 %v801_v7, 6.0  ;;  %v834_v47 = vmin.f32 %v802_v33, 6.0 }
 0x18b   : > { %v803_v45 = vmax.f32 %v771_v35, 0.0  ;;  %v804_v9 = vmax.f32 %v772_v37, 0.0  ;;  %861 = vst [vmem:[%s1528_s30 + $0x40] sm:$0xff] %v829_v39  ;;  %862 = vst [vmem:[%s1528_s30 + $0x48] sm:$0xff] %v830_v63  ;;  %v735_v51 = vmul.f32 %v1636_v31, %v1469_v36  ;;  %v736_v49 = vmul.f32 %v1465_v34, %v1636_v31 }
 0x18c   : > { %863 = vst [vmem:[%s1528_s30 + $0x50] sm:$0xff] %v831_v41  ;;  %864 = vst [vmem:[%s1528_s30 + $0x58] sm:$0xff] %v832_v61  ;;  %v737_v10 = vmul.f32 %v1636_v31, %v1477_v40  ;;  %v738_v55 = vmul.f32 %v1473_v38, %v1636_v31  ;;  %v739_v59 = vmul.f32 %v1636_v31, %v1485_v44 }
 0x18d   : > { %865 = vst [vmem:[%s1528_s30 + $0x60] sm:$0xff] %v833_v43  ;;  %866 = vst [vmem:[%s1528_s30 + $0x68] sm:$0xff] %v834_v47  ;;  %v835_v53 = vmin.f32 %v803_v45, 6.0  ;;  %v836_v11 = vmin.f32 %v804_v9, 6.0  ;;  %v740_v12 = vmul.f32 %v1481_v42, %v1636_v31  ;;  %v773_v36 = vadd.f32 %v1652_v8, %v735_v51 }
 0x18e   : > { %v774_v34 = vadd.f32 %v1652_v8, %v736_v49  ;;  %v775_v57 = vadd.f32 %v1652_v8, %v737_v10  ;;  %v776_v40 = vadd.f32 %v1652_v8, %v738_v55  ;;  %v777_v38 = vadd.f32 %v1652_v8, %v739_v59 }
 0x18f   : > { %867 = vst [vmem:[%s1528_s30 + $0x70] sm:$0xff] %v835_v53  ;;  %868 = vst [vmem:[%s1528_s30 + $0x78] sm:$0xff] %v836_v11  ;;  %v778_v13 = vadd.f32 %v1652_v8, %v740_v12  ;;  %v741_v44 = vmul.f32 %v1636_v31, %v1493_v48  ;;  %v742_v42 = vmul.f32 %v1489_v46, %v1636_v31  ;;  %v805_v14 = vmax.f32 %v773_v36, 0.0 }
 0x190   : > { %v806_v15 = vmax.f32 %v774_v34, 0.0  ;;  %v807_v16 = vmax.f32 %v775_v57, 0.0  ;;  %v808_v17 = vmax.f32 %v776_v40, 0.0  ;;  %v809_v18 = vmax.f32 %v777_v38, 0.0 }
 0x191   : > { %v810_v19 = vmax.f32 %v778_v13, 0.0  ;;  %v779_v20 = vadd.f32 %v1652_v8, %v741_v44  ;;  %v780_v21 = vadd.f32 %v1652_v8, %v742_v42  ;;  %v837_v22 = vmin.f32 %v805_v14, 6.0 }
 0x192   : > { %v838_v48 = vmin.f32 %v806_v15, 6.0  ;;  %v839_v23 = vmin.f32 %v807_v16, 6.0  ;;  %v840_v46 = vmin.f32 %v808_v17, 6.0  ;;  %v841_v24 = vmin.f32 %v809_v18, 6.0 }
 0x193   : > { %v842_v25 = vmin.f32 %v810_v19, 6.0  ;;  %v811_v26 = vmax.f32 %v779_v20, 0.0  ;;  %v812_v27 = vmax.f32 %v780_v21, 0.0  ;;  %869 = vst [vmem:[%s1528_s30 + $0x80] sm:$0xff] %v837_v22  ;;  %v743_v28 = vmul.f32 %v1636_v31, %v1501_v52 }
 0x194   : > { %870 = vst [vmem:[%s1528_s30 + $0x88] sm:$0xff] %v838_v48  ;;  %871 = vst [vmem:[%s1528_s30 + $0x90] sm:$0xff] %v839_v23  ;;  %v744_v29 = vmul.f32 %v1497_v50, %v1636_v31  ;;  %v745_v30 = vmul.f32 %v1636_v31, %v1509_v56  ;;  %v746_v32 = vmul.f32 %v1505_v54, %v1636_v31 }
 0x195   : > { %872 = vst [vmem:[%s1528_s30 + $0x98] sm:$0xff] %v840_v46  ;;  %873 = vst [vmem:[%s1528_s30 + $0xa0] sm:$0xff] %v841_v24  ;;  %v843_v1 = vmin.f32 %v811_v26, 6.0  ;;  %v844_v2 = vmin.f32 %v812_v27, 6.0  ;;  %v747_v3 = vmul.f32 %v1636_v31, %v1517_v60  ;;  %v748_v4 = vmul.f32 %v1513_v58, %v1636_v31 }
 0x196   : > { %874 = vst [vmem:[%s1528_s30 + $0xa8] sm:$0xff] %v842_v25  ;;  %v781_v52 = vadd.f32 %v1652_v8, %v743_v28  ;;  %v782_v50 = vadd.f32 %v1652_v8, %v744_v29  ;;  %v783_v5 = vadd.f32 %v1652_v8, %v745_v30  ;;  %v784_v56 = vadd.f32 %v1652_v8, %v746_v32 }
 0x197   : > { %875 = vst [vmem:[%s1528_s30 + $0xb0] sm:$0xff] %v843_v1  ;;  %876 = vst [vmem:[%s1528_s30 + $0xb8] sm:$0xff] %v844_v2  ;;  %v785_v54 = vadd.f32 %v1652_v8, %v747_v3  ;;  %v786_v6 = vadd.f32 %v1652_v8, %v748_v4  ;;  %v749_v60 = vmul.f32 %v1636_v31, %v1525_v0 }
 0x198   : > { %v750_v58 = vmul.f32 %v1521_v62, %v1636_v31  ;;  %v813_v7 = vmax.f32 %v781_v52, 0.0  ;;  %v814_v33 = vmax.f32 %v782_v50, 0.0  ;;  %v815_v35 = vmax.f32 %v783_v5, 0.0 }
 0x199   : > { %v816_v37 = vmax.f32 %v784_v56, 0.0  ;;  %v817_v39 = vmax.f32 %v785_v54, 0.0  ;;  %v818_v63 = vmax.f32 %v786_v6, 0.0  ;;  %v787_v41 = vadd.f32 %v1652_v8, %v749_v60 }
 0x19a   : > { %v788_v61 = vadd.f32 %v1652_v8, %v750_v58  ;;  %v845_v0 = vmin.f32 %v813_v7, 6.0  ;;  %v846_v43 = vmin.f32 %v814_v33, 6.0  ;;  %v847_v62 = vmin.f32 %v815_v35, 6.0 }
 0x19b   : > { %v848_v31 = vmin.f32 %v816_v37, 6.0  ;;  %v849_v47 = vmin.f32 %v817_v39, 6.0  ;;  %v850_v45 = vmin.f32 %v818_v63, 6.0  ;;  %v819_v9 = vmax.f32 %v787_v41, 0.0 }
 0x19c   : > { %v820_v51 = vmax.f32 %v788_v61, 0.0  ;;  %877 = vst [vmem:[%s1528_s30 + $0xc0] sm:$0xff] %v845_v0  ;;  %878 = vst [vmem:[%s1528_s30 + $0xc8] sm:$0xff] %v846_v43 }
 0x19d   : > { %879 = vst [vmem:[%s1528_s30 + $0xd0] sm:$0xff] %v847_v62  ;;  %880 = vst [vmem:[%s1528_s30 + $0xd8] sm:$0xff] %v848_v31  ;;  %v851_v49 = vmin.f32 %v819_v9, 6.0 }
 0x19e   : > { %881 = vst [vmem:[%s1528_s30 + $0xe0] sm:$0xff] %v849_v47  ;;  %882 = vst [vmem:[%s1528_s30 + $0xe8] sm:$0xff] %v850_v45  ;;  %v852_v10 = vmin.f32 %v820_v51, 6.0 }
 0x19f   : > { %883 = vst [vmem:[%s1528_s30 + $0xf0] sm:$0xff] %v851_v49 }
 0x1a0   : > { %884 = vst [vmem:[%s1528_s30 + $0xf8] sm:$0xff] %v852_v10 }
 0x1a1 PF: > { %s893_s11 = smul.u32 %s1261_s18, %s1265_s19  ;;  %s900_s12 = sshll.u32 %s1528_s30, 4  ;;  %s1771_s12 = int_to_ptr.vmem [resolvable:$true] %s900_s12 }
 0x1a2   : > { %s1780_s27 = scalar_lea.sflag [#allocation5], %s203_s8  ;;  %s1183_s5 = scalar_lea.vmem %s1771_s12, 4096 }
 0x1a3   : > { %s1021_s13 = sshll.u32 %s893_s11, 12  ;;  %p1184_p4 = scmp.ne.s32.totalorder %s1771_s12, %s1183_s5 }
 0x1a4   : > { %s1776_s24 = scalar_lea.hbm %s1836_s4, %s1021_s13  ;;  %s1280_s18 = smov [#allocation4]  }
 0x1a5   : > { %p1185_p5 = pnand %p1184_p4, %p1361_p6  ;;  %s1187_s19 = sshll.u32 %s1280_s18, 4  ;;  %s1188_s19 = int_to_ptr.vmem [resolvable:$false] %s1187_s19 }
 0x1a6   : > { %s1189_s30 = scalar_lea.vmem %s1188_s19, 8192  ;;  %p1190_p9 = scmp.lt.s32.totalorder %s1771_s12, %s1188_s19 }
 0x1a7   : > { %p1186_p7 = pneg %p1185_p5  ;;  %p1191_p10 = scmp.lt.s32.totalorder %s1189_s30, %s1183_s5 }
 0x1a9   : > { %p1192_p11 = por %p1191_p10, %p1190_p9 }
 0x1ab   : > { %p1193_p12 = pnand %p1192_p11, %p1186_p7 }
 0x1ad   : > { %1196 = shalt.err (!%p1193_p12)
}
 0x1ae   : > { %s1197_s8 = scalar_lea.hbm %s1776_s24, 4096  ;;  %s1201_s10 = scalar_lea.hbm %s1836_s4, 8192 }
 0x1af   : > { %p1198_p13 = scmp.ne.s32.totalorder %s1776_s24, %s1197_s8  ;;  %p1202_p2 = scmp.lt.u32.totalorder %s1776_s24, %s1836_s4 }
 0x1b0   : > { %p1203_p3 = scmp.lt.u32.totalorder %s1201_s10, %s1197_s8  ;;  %p1205_p5 = scmp.lt.u32.totalorder %s1197_s8, %s1776_s24 }
 0x1b1   : > { %p1199_p0 = pnand %p1198_p13, %p1361_p6 }
 0x1b2   : > { %p1204_p4 = por %p1203_p3, %p1202_p2 }
 0x1b3   : > { %p1200_p1 = pneg %p1199_p0 }
 0x1b4   : > { %p1206_p7 = por %p1205_p5, %p1204_p4 }
 0x1b6   : > { %p1207_p9 = pnand %p1206_p7, %p1200_p1 }
 0x1b8   : > { %1210 = shalt.err (!%p1207_p9)
}
 0x1b9   : > { %s1281_s14 = smov 128   ;;  %s1282_s23 = smov 8  }
 0x1ba   : > { %1107 = dma.vmem_to_hbm [thread:$0]  (%p1361_p6), %s1771_s12, 4096, %s1776_s24, %s1780_s27, %s1281_s14, %s1281_s14, %s1282_s23  }
 0x1bb PF: > { %p1113_p10 = scmp.ge.s32.totalorder %s1277_s22, 2  ;;  %s915_s5 = sand.u32 1, %s1249_s15  }
 0x1bc   : > { %s916_s18 = scalar_lea.sflag [#allocation5], %s915_s5 }
 0x1bd   : > { %p1110_p11 = pnand %p1113_p10, %p1368_p8 }
 0x1bf   : > { %1244 = dma.done.wait (!%p1110_p11), %s916_s18, 4096  }
 0x1c0   : > { %1246 = vsyncadd (!%p1110_p11), %s916_s18, 4294963200  ;;  %s17_s22 = sadd.s32 1, %s1277_s22   ;;  %s1840_s15 = smov %s1253_s16 }
 0x1c1   : > { %p14_p12 = scmp.ge.s32.totalorder %s17_s22, 6   ;;  %s1841_s16 = smov %s1257_s17 }
 0x1c2   : > { %s1842_s17 = smov %s1377_s7  ;;  %s1843_s18 = smov %s1269_s20 }
 0x1c3   : > { %s1844_s19 = smov %s1273_s21  ;;  %s1845_s20 = smov %s1848_s25 }
 0x1c4   : > { %s1846_s21 = smov %s1852_s26  ;;  %16 = sbr.rel (!%p14_p12) target bundleno = 5 (0x5), region = 83 }
 0x1cb   :  { %921 = vsyncpa [#allocation5], 1 }
 0x1cc   :  { %923 = vsyncpa [#allocation5 + $0x1], 1 }

</bundles_post_ra>
